<compile_context>
chip_gen: v7x
topology: tpu7x:2x2x1
jax: 0.10.0
libtpu: 0.0.40
codegen_flags: <defaults>
</compile_context>

<pallas_src>
import numpy as np

import jax
import jax.numpy as jnp
from jax.experimental import pallas as pl
from jax.experimental.pallas import tpu as pltpu

H = W = 4
P = H * W  # 16 spatial positions


# ----------------------------- Pallas kernel ------------------------------- #

def _traffic_cnn_kernel(x_ref, w1_ref, b1_ref, w2_ref, b2_ref,
                        w3_ref, b3_ref, w4_ref, b4_ref, o_ref):
    """Fused conv1 -> relu -> conv2 -> relu -> fc1 -> relu -> fc2 for one M tile.

    Both convs were folded into dense matmuls at parameter-prep time, so the body
    is four MXU matmuls (bf16 in, f32 accumulate).  Bias+relu epilogues run in the
    dtype the biases were prepared in (bf16 on v6e/v7x, f32 on v5e).
    """
    cdt = w1_ref.dtype  # MXU compute dtype (bf16)

    def bias_relu(h_f32, b_ref):
        b = b_ref[...]
        if b.dtype == cdt:                              # bf16 epilogue (v6e/v7x)
            return jnp.maximum(h_f32.astype(cdt) + b, 0.0)
        return jnp.maximum(h_f32 + b, 0.0).astype(cdt)  # f32 epilogue (v5e-safe)

    x = x_ref[...].astype(cdt)                          # f32 HBM read, free cast
    h = bias_relu(jnp.dot(x, w1_ref[...], preferred_element_type=jnp.float32), b1_ref)
    h = bias_relu(jnp.dot(h, w2_ref[...], preferred_element_type=jnp.float32), b2_ref)
    h = bias_relu(jnp.dot(h, w3_ref[...], preferred_element_type=jnp.float32), b3_ref)
    o = jnp.dot(h, w4_ref[...], preferred_element_type=jnp.float32) + b4_ref[...]
    o_ref[...] = o.astype(o_ref.dtype)                  # bf16 lane-dense store


# --------------------------- parameter preparation -------------------------- #

def _shift_select(h, w):
    """sel[kh, kw, p, q] = 1 if output pixel p=(i,j) reads input pixel
    q=(i+kh-1, j+kw-1) for tap (kh,kw) of a 3x3 SAME (pad=1) conv."""
    sel = np.zeros((3, 3, h * w, h * w), np.float32)
    for kh in range(3):
        for kw in range(3):
            for i in range(h):
                for j in range(w):
                    ii, jj = i + kh - 1, j + kw - 1
                    if 0 <= ii < h and 0 <= jj < w:
                        sel[kh, kw, i * w + j, ii * w + jj] = 1.0
    return sel


def conv3x3_same_as_dense(w_oihw, h=H, w=W):
    """Fold a 3x3 SAME conv over a fixed h x w map into a dense matmul weight.

    Row index (input feature)  = cin  * h*w + (i*w + j)   (NCHW per-image flatten)
    Col index (output feature) = cout * h*w + (i*w + j)   (NCHW per-image flatten)
    """
    cout, cin, kh, kw = w_oihw.shape
    assert (kh, kw) == (3, 3)
    sel = jnp.asarray(_shift_select(h, w))                             # (3,3,P,P)
    big = jnp.einsum('hwpq,oihw->iqop', sel, w_oihw.astype(jnp.float32))
    return big.reshape(cin * h * w, cout * h * w)


def _epilogue_dtype_for_backend():
    """bf16 bias+relu on bf16-native VPUs (v6e/v7x); f32 elsewhere (v5e has no
    bf16 VALU, so bf16 elementwise would be emulated)."""
    try:
        kind = jax.devices()[0].device_kind.lower()
    except Exception:
        return jnp.float32
    if "v6" in kind or "v7" in kind:
        return jnp.bfloat16
    return jnp.float32


def prepare_params(params, compute_dtype=jnp.bfloat16, epilogue_dtype=None):
    """One-time prep: fold convs to dense matmuls, broadcast conv biases over the
    16 pixels, zero-pad FC output dims to 128 (lane-dense stores), cast weights to
    bf16, and pre-reshape/cast biases to (1, N) in the epilogue dtype."""
    if epilogue_dtype is None:
        epilogue_dtype = _epilogue_dtype_for_backend()

    w1, b1, w2, b2, fw1, fb1, fw2, fb2 = params

    W1 = conv3x3_same_as_dense(w1)                    # (16, 256)
    B1 = jnp.repeat(b1, P)                            # (256,)  index = c*16 + p
    W2 = conv3x3_same_as_dense(w2)                    # (256, 512)
    B2 = jnp.repeat(b2, P)                            # (512,)

    # fc1: 512 -> 64 padded to 128; fc2: 64 -> 4 padded to 128 x 128 (zero pad, so
    # the extra columns/rows contribute exactly zero and get sliced off later).
    W3 = jnp.pad(fw1, ((0, 0), (0, 128 - fw1.shape[1])))                    # (512, 128)
    B3 = jnp.pad(fb1, (0, 128 - fb1.shape[0]))                              # (128,)
    W4 = jnp.pad(fw2, ((0, 128 - fw2.shape[0]), (0, 128 - fw2.shape[1])))   # (128, 128)
    B4 = jnp.pad(fb2, (0, 128 - fb2.shape[0]))                              # (128,)

    weights = tuple(x.astype(compute_dtype) for x in (W1, W2, W3, W4))
    biases = (B1.reshape(1, -1).astype(epilogue_dtype),
              B2.reshape(1, -1).astype(epilogue_dtype),
              B3.reshape(1, -1).astype(epilogue_dtype),
              B4.reshape(1, -1).astype(jnp.float32))   # final (no-relu) bias: f32
    return weights, biases, fw2.shape[1]               # keep true logits width (4)


# ------------------------------ forward wrapper ----------------------------- #

def _round_up(n, m):
    return ((n + m - 1) // m) * m


def traffic_cnn_forward(x_nchw, prepared, *, block_b=2048):
    """Pallas implementation of TrafficCNN.forward.  x_nchw: (B, 1, 4, 4) f32."""
    weights, biases, n_out = prepared
    W1, W2, W3, W4 = weights
    B1, B2, B3, B4 = biases

    B = x_nchw.shape[0]
    x_flat = x_nchw.reshape(B, P)                      # f32, NCHW flatten (Cin = 1)

    # M-tile choice: big enough to amortize per-step overhead / tiny input DMAs,
    # capped at 2048 rows so per-step VMEM (~12-15 MB) fits every generation's
    # scoped default (incl. v7x), and split into >=2 grid steps whenever there is
    # enough work so both v7x TensorCores get a share.  Multiples of 16 rows keep
    # bf16 output blocks aligned to the native (16, 128) tile.
    tb = min(block_b, max(16, _round_up(-(-B // 2), 16)))
    bp = _round_up(B, tb)
    if bp != B:
        x_flat = jnp.pad(x_flat, ((0, bp - B), (0, 0)))   # ragged tail only
    grid = (bp // tb,)

    full = lambda i: (0, 0)      # weights / biases: same (only) block every step
    rows = lambda i: (i, 0)      # activations: tile over M

    out = pl.pallas_call(
        _traffic_cnn_kernel,
        out_shape=jax.ShapeDtypeStruct((bp, W4.shape[1]), jnp.bfloat16),
        grid=grid,
        in_specs=[
            pl.BlockSpec((tb, P), rows),
            pl.BlockSpec(W1.shape, full), pl.BlockSpec(B1.shape, full),
            pl.BlockSpec(W2.shape, full), pl.BlockSpec(B2.shape, full),
            pl.BlockSpec(W3.shape, full), pl.BlockSpec(B3.shape, full),
            pl.BlockSpec(W4.shape, full), pl.BlockSpec(B4.shape, full),
        ],
        out_specs=pl.BlockSpec((tb, W4.shape[1]), rows),
        compiler_params=pltpu.CompilerParams(
            dimension_semantics=("parallel",),   # shard M tiles across v7x's 2 TCs
        ),
    )(x_flat, W1, B1, W2, B2, W3, B3, W4, B4)

    return out[:B, :n_out].astype(jnp.float32)


# ------------------------------ reference & init ---------------------------- #

def reference_forward(x_nchw, params):
    """Pure-JAX f32 reference (lax conv), faithful to the PyTorch module."""
    w1, b1, w2, b2, fw1, fb1, fw2, fb2 = params
    dn = ('NCHW', 'OIHW', 'NCHW')
    y = jax.lax.conv_general_dilated(x_nchw, w1, (1, 1), 'SAME', dimension_numbers=dn)
    y = jax.nn.relu(y + b1.reshape(1, -1, 1, 1))
    y = jax.lax.conv_general_dilated(y, w2, (1, 1), 'SAME', dimension_numbers=dn)
    y = jax.nn.relu(y + b2.reshape(1, -1, 1, 1))
    y = y.reshape(y.shape[0], -1)                    # NCHW flatten, like torch .view
    y = jax.nn.relu(y @ fw1 + fb1)
    return y @ fw2 + fb2


def init_params(key):
    ks = jax.random.split(key, 8)
    s = 0.1
    w1 = s * jax.random.normal(ks[0], (16, 1, 3, 3), jnp.float32)      # OIHW
    b1 = s * jax.random.normal(ks[1], (16,), jnp.float32)
    w2 = s * jax.random.normal(ks[2], (32, 16, 3, 3), jnp.float32)     # OIHW
    b2 = s * jax.random.normal(ks[3], (32,), jnp.float32)
    fw1 = s * jax.random.normal(ks[4], (32 * 4 * 4, 64), jnp.float32)  # (in, out)
    fb1 = s * jax.random.normal(ks[5], (64,), jnp.float32)
    fw2 = s * jax.random.normal(ks[6], (64, 4), jnp.float32)
    fb2 = s * jax.random.normal(ks[7], (4,), jnp.float32)
    return (w1, b1, w2, b2, fw1, fb1, fw2, fb2)


if __name__ == "__main__":
    key = jax.random.PRNGKey(0)
    k_params, k_x = jax.random.split(key)
    params = init_params(k_params)
    prepared = prepare_params(params)

    # fc1 expects 32*4*4 features => input spatial is 4x4, single channel.
    x = jax.random.normal(k_x, (2, 1, 4, 4), jnp.float32)

    out = jax.block_until_ready(traffic_cnn_forward(x, prepared))
    ref = jax.block_until_ready(reference_forward(x, params))

    assert out.shape == (2, 4), out.shape
    # bf16 MXU inputs / bf16 output with f32 accumulation -> relaxed tolerance
    # vs the f32 reference (activations are re-quantized to bf16 after each layer).
    assert jnp.allclose(out, ref, rtol=5e-2, atol=5e-2), (out, ref)

    print("KERNEL_OK")
</pallas_src>

<mosaic_0001>
module attributes {stable_mosaic.version = 11 : i64} {
  func.func @_traffic_cnn_kernel(%arg0: i32, %arg1: memref<16x16xf32, #tpu.memory_space<vmem>>, %arg2: memref<16x256xbf16, #tpu.memory_space<vmem>>, %arg3: memref<1x256xf32, #tpu.memory_space<vmem>>, %arg4: memref<256x512xbf16, #tpu.memory_space<vmem>>, %arg5: memref<1x512xf32, #tpu.memory_space<vmem>>, %arg6: memref<512x128xbf16, #tpu.memory_space<vmem>>, %arg7: memref<1x128xf32, #tpu.memory_space<vmem>>, %arg8: memref<128x128xbf16, #tpu.memory_space<vmem>>, %arg9: memref<1x128xf32, #tpu.memory_space<vmem>>, %arg10: memref<16x128xbf16, #tpu.memory_space<vmem>>) attributes {dimension_semantics = [#tpu.dimension_semantics<parallel>], iteration_bounds = array<i64: 1>, scalar_prefetch = 0 : i64, scratch_operands = 0 : i64, tpu.core_type = #tpu.core_type<tc>, window_params = [{transform_indices = @transform_0, window_bounds = array<i64: 16, 16>}, {pipeline_mode = #tpu.pipeline_mode<synchronous>, transform_indices = @transform_1, window_bounds = array<i64: 16, 256>}, {pipeline_mode = #tpu.pipeline_mode<synchronous>, transform_indices = @transform_2, window_bounds = array<i64: 1, 256>}, {pipeline_mode = #tpu.pipeline_mode<synchronous>, transform_indices = @transform_3, window_bounds = array<i64: 256, 512>}, {pipeline_mode = #tpu.pipeline_mode<synchronous>, transform_indices = @transform_4, window_bounds = array<i64: 1, 512>}, {pipeline_mode = #tpu.pipeline_mode<synchronous>, transform_indices = @transform_5, window_bounds = array<i64: 512, 128>}, {pipeline_mode = #tpu.pipeline_mode<synchronous>, transform_indices = @transform_6, window_bounds = array<i64: 1, 128>}, {pipeline_mode = #tpu.pipeline_mode<synchronous>, transform_indices = @transform_7, window_bounds = array<i64: 128, 128>}, {pipeline_mode = #tpu.pipeline_mode<synchronous>, transform_indices = @transform_8, window_bounds = array<i64: 1, 128>}, {transform_indices = @transform_9, window_bounds = array<i64: 16, 128>}]} {
    %c0 = arith.constant 0 : index
    %c0_0 = arith.constant 0 : index
    %0 = vector.load %arg1[%c0, %c0_0] : memref<16x16xf32, #tpu.memory_space<vmem>>, vector<16x16xf32>
    %1 = arith.truncf %0 : vector<16x16xf32> to vector<16x16xbf16>
    %c0_1 = arith.constant 0 : index
    %c0_2 = arith.constant 0 : index
    %2 = vector.load %arg2[%c0_1, %c0_2] : memref<16x256xbf16, #tpu.memory_space<vmem>>, vector<16x256xbf16>
    %cst = arith.constant dense<0.000000e+00> : vector<16x256xf32>
    %3 = tpu.matmul %1, %2, %cst {dimension_numbers = #tpu.dot_dimension_numbers<[1], [0], [0], [1], [0, 0, 1, 1], [], []>} : vector<16x16xbf16>, vector<16x256xbf16>, vector<16x256xf32> -> vector<16x256xf32>
    %c0_3 = arith.constant 0 : index
    %c0_4 = arith.constant 0 : index
    %4 = vector.load %arg3[%c0_3, %c0_4] : memref<1x256xf32, #tpu.memory_space<vmem>>, vector<1x256xf32>
    %5 = vector.broadcast %4 : vector<1x256xf32> to vector<16x256xf32>
    %6 = arith.addf %3, %5 : vector<16x256xf32>
    %cst_5 = arith.constant 0.000000e+00 : f32
    %7 = vector.broadcast %cst_5 : f32 to vector<16x256xf32>
    %8 = arith.maximumf %6, %7 : vector<16x256xf32>
    %9 = arith.truncf %8 : vector<16x256xf32> to vector<16x256xbf16>
    %c0_6 = arith.constant 0 : index
    %c0_7 = arith.constant 0 : index
    %10 = vector.load %arg4[%c0_6, %c0_7] : memref<256x512xbf16, #tpu.memory_space<vmem>>, vector<256x512xbf16>
    %cst_8 = arith.constant dense<0.000000e+00> : vector<16x512xf32>
    %11 = tpu.matmul %9, %10, %cst_8 {dimension_numbers = #tpu.dot_dimension_numbers<[1], [0], [0], [1], [0, 0, 1, 1], [], []>} : vector<16x256xbf16>, vector<256x512xbf16>, vector<16x512xf32> -> vector<16x512xf32>
    %c0_9 = arith.constant 0 : index
    %c0_10 = arith.constant 0 : index
    %12 = vector.load %arg5[%c0_9, %c0_10] : memref<1x512xf32, #tpu.memory_space<vmem>>, vector<1x512xf32>
    %13 = vector.broadcast %12 : vector<1x512xf32> to vector<16x512xf32>
    %14 = arith.addf %11, %13 : vector<16x512xf32>
    %cst_11 = arith.constant 0.000000e+00 : f32
    %15 = vector.broadcast %cst_11 : f32 to vector<16x512xf32>
    %16 = arith.maximumf %14, %15 : vector<16x512xf32>
    %17 = arith.truncf %16 : vector<16x512xf32> to vector<16x512xbf16>
    %c0_12 = arith.constant 0 : index
    %c0_13 = arith.constant 0 : index
    %18 = vector.load %arg6[%c0_12, %c0_13] : memref<512x128xbf16, #tpu.memory_space<vmem>>, vector<512x128xbf16>
    %cst_14 = arith.constant dense<0.000000e+00> : vector<16x128xf32>
    %19 = tpu.matmul %17, %18, %cst_14 {dimension_numbers = #tpu.dot_dimension_numbers<[1], [0], [0], [1], [0, 0, 1, 1], [], []>} : vector<16x512xbf16>, vector<512x128xbf16>, vector<16x128xf32> -> vector<16x128xf32>
    %c0_15 = arith.constant 0 : index
    %c0_16 = arith.constant 0 : index
    %20 = vector.load %arg7[%c0_15, %c0_16] : memref<1x128xf32, #tpu.memory_space<vmem>>, vector<1x128xf32>
    %21 = vector.broadcast %20 : vector<1x128xf32> to vector<16x128xf32>
    %22 = arith.addf %19, %21 : vector<16x128xf32>
    %cst_17 = arith.constant 0.000000e+00 : f32
    %23 = vector.broadcast %cst_17 : f32 to vector<16x128xf32>
    %24 = arith.maximumf %22, %23 : vector<16x128xf32>
    %25 = arith.truncf %24 : vector<16x128xf32> to vector<16x128xbf16>
    %c0_18 = arith.constant 0 : index
    %c0_19 = arith.constant 0 : index
    %26 = vector.load %arg8[%c0_18, %c0_19] : memref<128x128xbf16, #tpu.memory_space<vmem>>, vector<128x128xbf16>
    %cst_20 = arith.constant dense<0.000000e+00> : vector<16x128xf32>
    %27 = tpu.matmul %25, %26, %cst_20 {dimension_numbers = #tpu.dot_dimension_numbers<[1], [0], [0], [1], [0, 0, 1, 1], [], []>} : vector<16x128xbf16>, vector<128x128xbf16>, vector<16x128xf32> -> vector<16x128xf32>
    %c0_21 = arith.constant 0 : index
    %c0_22 = arith.constant 0 : index
    %28 = vector.load %arg9[%c0_21, %c0_22] : memref<1x128xf32, #tpu.memory_space<vmem>>, vector<1x128xf32>
    %29 = vector.broadcast %28 : vector<1x128xf32> to vector<16x128xf32>
    %30 = arith.addf %27, %29 : vector<16x128xf32>
    %31 = arith.truncf %30 : vector<16x128xf32> to vector<16x128xbf16>
    %c0_23 = arith.constant 0 : index
    %c0_24 = arith.constant 0 : index
    %32 = vector.load %arg10[%c0_23, %c0_24] : memref<16x128xbf16, #tpu.memory_space<vmem>>, vector<16x128xbf16>
    tpu.vector_store %arg10[%c0_23, %c0_24], %31 {strides = array<i32>} : memref<16x128xbf16, #tpu.memory_space<vmem>>, vector<16x128xbf16>,
    return
  }
  func.func @transform_0(%arg0: i32) -> (i32, i32) {
    %c0_i32 = arith.constant 0 : i32
    %c0_i32_0 = arith.constant 0 : i32
    return %arg0, %c0_i32 : i32, i32
  }
  func.func @transform_1(%arg0: i32) -> (i32, i32) {
    %c0_i32 = arith.constant 0 : i32
    %c0_i32_0 = arith.constant 0 : i32
    %c0_i32_1 = arith.constant 0 : i32
    return %c0_i32, %c0_i32_0 : i32, i32
  }
  func.func @transform_2(%arg0: i32) -> (i32, i32) {
    %c0_i32 = arith.constant 0 : i32
    %c0_i32_0 = arith.constant 0 : i32
    %c0_i32_1 = arith.constant 0 : i32
    return %c0_i32, %c0_i32_0 : i32, i32
  }
  func.func @transform_3(%arg0: i32) -> (i32, i32) {
    %c0_i32 = arith.constant 0 : i32
    %c0_i32_0 = arith.constant 0 : i32
    %c0_i32_1 = arith.constant 0 : i32
    return %c0_i32, %c0_i32_0 : i32, i32
  }
  func.func @transform_4(%arg0: i32) -> (i32, i32) {
    %c0_i32 = arith.constant 0 : i32
    %c0_i32_0 = arith.constant 0 : i32
    %c0_i32_1 = arith.constant 0 : i32
    return %c0_i32, %c0_i32_0 : i32, i32
  }
  func.func @transform_5(%arg0: i32) -> (i32, i32) {
    %c0_i32 = arith.constant 0 : i32
    %c0_i32_0 = arith.constant 0 : i32
    %c0_i32_1 = arith.constant 0 : i32
    return %c0_i32, %c0_i32_0 : i32, i32
  }
  func.func @transform_6(%arg0: i32) -> (i32, i32) {
    %c0_i32 = arith.constant 0 : i32
    %c0_i32_0 = arith.constant 0 : i32
    %c0_i32_1 = arith.constant 0 : i32
    return %c0_i32, %c0_i32_0 : i32, i32
  }
  func.func @transform_7(%arg0: i32) -> (i32, i32) {
    %c0_i32 = arith.constant 0 : i32
    %c0_i32_0 = arith.constant 0 : i32
    %c0_i32_1 = arith.constant 0 : i32
    return %c0_i32, %c0_i32_0 : i32, i32
  }
  func.func @transform_8(%arg0: i32) -> (i32, i32) {
    %c0_i32 = arith.constant 0 : i32
    %c0_i32_0 = arith.constant 0 : i32
    %c0_i32_1 = arith.constant 0 : i32
    return %c0_i32, %c0_i32_0 : i32, i32
  }
  func.func @transform_9(%arg0: i32) -> (i32, i32) {
    %c0_i32 = arith.constant 0 : i32
    %c0_i32_0 = arith.constant 0 : i32
    return %arg0, %c0_i32 : i32, i32
  }
}

</mosaic_0001>

<bundles_post_ra>
// kernel: tpu_custom_call.1
= control target key start
LH: loop header
LB: loop body
LE: loop exit
PB: predicated region body
PF: predicated region fallthrough
CT: control target
= control target key end

     0   :  { %14 = vsyncpa [#allocation3], 0  ;;  %s1861_s0 = inlined_call_operand.hbm [shape: f32[16,16], index: 0, kind: input, shape index: {}]   ;;  %s1862_s1 = inlined_call_operand.hbm [shape: bf16[16,256], index: 1, kind: input, shape index: {}]   ;;  %s1863_s2 = inlined_call_operand.vmem [shape: f32[1,256], index: 2, kind: input, shape index: {}]   ;;  %s1864_s3 = inlined_call_operand.hbm [shape: bf16[256,512], index: 3, kind: input, shape index: {}]   ;;  %s1865_s4 = inlined_call_operand.vmem [shape: f32[1,512], index: 4, kind: input, shape index: {}]   ;;  %s1866_s5 = inlined_call_operand.hbm [shape: bf16[512,128], index: 5, kind: input, shape index: {}]   ;;  %s1867_s6 = inlined_call_operand.vmem [shape: f32[1,128], index: 6, kind: input, shape index: {}]   ;;  %s1868_s7 = inlined_call_operand.hbm [shape: bf16[128,128], index: 7, kind: input, shape index: {}]   ;;  %s1869_s8 = inlined_call_operand.vmem [shape: f32[1,128], index: 8, kind: input, shape index: {}]   ;;  %s1870_s9 = inlined_call_operand.hbm [shape: bf16[16,128], index: 9, kind: output, shape index: {}]  }
   0x1   :  { %15 = vsyncpa [#allocation6], 0 }
   0x2   :  { %16 = vsyncpa [#allocation9], 0 }
   0x3   :  { %17 = vsyncpa [#allocation4], 0  ;;  %s1660_s30 = smov [#allocation5]   ;;  %s1661_s11 = smov [#allocation8]  }
   0x4   :  { %s35_s10 = sshll.u32 %s1660_s30, 4  ;;  %s63_s12 = sshll.u32 %s1661_s11, 4  ;;  %s36_s10 = int_to_ptr.vmem [resolvable:$true] %s35_s10  ;;  %s1725_s12 = int_to_ptr.vmem [resolvable:$true] %s63_s12 }
   0x5   :  { %s1520_s15 = scalar_lea.hbm %s1862_s1, 256 }
   0x6   :  { %p1521_p0 = scmp.ne.s32.totalorder %s1862_s1, %s1520_s15  ;;  %p1524_p1 = scmp.lt.u32.totalorder %s1520_s15, %s1862_s1 }
   0x8   :  { %p1526_p2 = pnand %p1524_p1, %p1521_p0 }
   0xa   :  { %1529 = shalt.err (!%p1526_p2)
}
   0xb   :  { %s1530_s20 = scalar_lea.vmem %s36_s10, 256  ;;  %p1535_p4 = scmp.lt.s32.totalorder %s36_s10, %s36_s10 }
   0xc   :  { %p1531_p3 = scmp.ne.s32.totalorder %s36_s10, %s1530_s20  ;;  %p1536_p5 = scmp.lt.s32.totalorder %s1530_s20, %s1530_s20 }
   0xe   :  { %p1537_p6 = por %p1536_p5, %p1535_p4 }
  0x10   :  { %p1538_p7 = pnand %p1537_p6, %p1531_p3 }
  0x12   :  { %1541 = shalt.err (!%p1538_p7)
}
  0x13   :  { %s1662_s21 = smov 128   ;;  %s1663_s22 = smov 8  }
  0x14   :  { %41 = dma.hbm_to_vmem [thread:$0]  %s1862_s1, 256, %s36_s10, [#allocation6], %s1662_s21, %s1662_s21, %s1663_s22  }
  0x15   :  { %s1542_s27 = scalar_lea.hbm %s1866_s5, 4096 }
  0x16   :  { %p1543_p8 = scmp.ne.s32.totalorder %s1866_s5, %s1542_s27  ;;  %p1546_p9 = scmp.lt.u32.totalorder %s1542_s27, %s1866_s5 }
  0x18   :  { %p1548_p10 = pnand %p1546_p9, %p1543_p8 }
  0x1a   :  { %1551 = shalt.err (!%p1548_p10)
}
  0x1b   :  { %s1552_s13 = scalar_lea.vmem %s1725_s12, 4096  ;;  %p1557_p12 = scmp.lt.s32.totalorder %s1725_s12, %s1725_s12 }
  0x1c   :  { %p1553_p11 = scmp.ne.s32.totalorder %s1725_s12, %s1552_s13  ;;  %p1558_p13 = scmp.lt.s32.totalorder %s1552_s13, %s1552_s13 }
  0x1e   :  { %p1559_p0 = por %p1558_p13, %p1557_p12 }
  0x20   :  { %p1560_p1 = pnand %p1559_p0, %p1553_p11 }
  0x22   :  { %1563 = shalt.err (!%p1560_p1)
}
  0x23   :  { %s1664_s1 = smov 64   ;;  %s1665_s10 = smov 4  }
  0x24   :  { %69 = dma.hbm_to_vmem [thread:$0]  %s1866_s5, 4096, %s1725_s12, [#allocation9], %s1664_s1, %s1664_s1, %s1665_s10  }
  0x25   :  { %s1666_s16 = smov [#allocation2]   ;;  %s1667_s18 = smov [#allocation7]  }
  0x26   :  { %s23_s17 = sshll.u32 %s1666_s16, 4  ;;  %s49_s19 = sshll.u32 %s1667_s18, 4  ;;  %s24_s17 = int_to_ptr.vmem [resolvable:$true] %s23_s17  ;;  %s1762_s19 = int_to_ptr.vmem [resolvable:$true] %s49_s19 }
  0x27   :  { %s1564_s24 = scalar_lea.hbm %s1861_s0, 256 }
  0x28   :  { %p1565_p2 = scmp.ne.s32.totalorder %s1861_s0, %s1564_s24  ;;  %p1568_p3 = scmp.lt.u32.totalorder %s1564_s24, %s1861_s0 }
  0x2a   :  { %p1570_p4 = pnand %p1568_p3, %p1565_p2 }
  0x2c   :  { %1573 = shalt.err (!%p1570_p4)
}
  0x2d   :  { %s1574_s5 = scalar_lea.vmem %s24_s17, 256  ;;  %p1579_p6 = scmp.lt.s32.totalorder %s24_s17, %s24_s17 }
  0x2e   :  { %p1575_p5 = scmp.ne.s32.totalorder %s24_s17, %s1574_s5  ;;  %p1580_p7 = scmp.lt.s32.totalorder %s1574_s5, %s1574_s5 }
  0x30   :  { %p1581_p8 = por %p1580_p7, %p1579_p6 }
  0x32   :  { %p1582_p9 = pnand %p1581_p8, %p1575_p5 }
  0x34   :  { %1585 = shalt.err (!%p1582_p9)
}
  0x35   :  { %29 = dma.hbm_to_vmem [thread:$0]  %s1861_s0, 256, %s24_s17, [#allocation3], %s1662_s21, %s1662_s21, %s1663_s22  }
  0x36   :  { %s1586_s13 = scalar_lea.hbm %s1864_s3, 8192 }
  0x37   :  { %p1587_p10 = scmp.ne.s32.totalorder %s1864_s3, %s1586_s13  ;;  %p1590_p11 = scmp.lt.u32.totalorder %s1586_s13, %s1864_s3 }
  0x39   :  { %p1592_p12 = pnand %p1590_p11, %p1587_p10 }
  0x3b   :  { %1595 = shalt.err (!%p1592_p12)
}
  0x3c   :  { %s1596_s20 = scalar_lea.vmem %s1762_s19, 8192  ;;  %p1601_p0 = scmp.lt.s32.totalorder %s1762_s19, %s1762_s19 }
  0x3d   :  { %p1597_p13 = scmp.ne.s32.totalorder %s1762_s19, %s1596_s20  ;;  %p1602_p1 = scmp.lt.s32.totalorder %s1596_s20, %s1596_s20 }
  0x3f   :  { %p1603_p2 = por %p1602_p1, %p1601_p0 }
  0x41   :  { %p1604_p3 = pnand %p1603_p2, %p1597_p13 }
  0x43   :  { %1607 = shalt.err (!%p1604_p3)
}
  0x44   :  { %s1668_s0 = smov 256   ;;  %s1669_s21 = smov 16  }
  0x45   :  { %55 = dma.hbm_to_vmem [thread:$0]  %s1864_s3, 8192, %s1762_s19, [#allocation6], %s1668_s0, %s1668_s0, %s1669_s21  }
  0x46   :  { %s1670_s23 = smov [#allocation10]   ;;  %s1608_s27 = scalar_lea.hbm %s1868_s7, 1024 }
  0x47   :  { %s77_s24 = sshll.u32 %s1670_s23, 4  ;;  %p1609_p4 = scmp.ne.s32.totalorder %s1868_s7, %s1608_s27  ;;  %s78_s24 = int_to_ptr.vmem [resolvable:$true] %s77_s24 }
  0x48   :  { %p1612_p5 = scmp.lt.u32.totalorder %s1608_s27, %s1868_s7 }
  0x4a   :  { %p1614_p6 = pnand %p1612_p5, %p1609_p4 }
  0x4c   :  { %1617 = shalt.err (!%p1614_p6)
}
  0x4d   :  { %s1618_s30 = scalar_lea.vmem %s78_s24, 1024  ;;  %p1623_p8 = scmp.lt.s32.totalorder %s78_s24, %s78_s24 }
  0x4e   :  { %p1619_p7 = scmp.ne.s32.totalorder %s78_s24, %s1618_s30  ;;  %p1624_p9 = scmp.lt.s32.totalorder %s1618_s30, %s1618_s30 }
  0x50   :  { %p1625_p10 = por %p1624_p9, %p1623_p8 }
  0x52   :  { %p1626_p11 = pnand %p1625_p10, %p1619_p7 }
  0x54   :  { %1629 = shalt.err (!%p1626_p11)
}
  0x55   :  { %83 = dma.hbm_to_vmem [thread:$0]  %s1868_s7, 1024, %s78_s24, [#allocation9], %s1664_s1, %s1664_s1, %s1665_s10  }
  0x56   :  { %1652 = dma.done.wait [#allocation3], 256  }
  0x57   :  { %1653 = vsyncadd [#allocation3], 4294967040 }
  0x58   :  { %1654 = dma.done.wait [#allocation6], 8448  }
  0x59   :  { %1655 = vsyncadd [#allocation6], 4294958848 }
  0x5a   :  { %1656 = dma.done.wait [#allocation9], 5120  }
  0x5b   :  { %1657 = vsyncadd [#allocation9], 4294962176  ;;  %v1671_v0 = vmov 0   ;;  %v1381_v1 = vld [vmem:[#allocation5 + $0x4] ss:$8 sps:$4 sm:$0xff]   ;;  %v102_v3 = vld [vmem:[#allocation2] sm:$0xff] }
  0x5c   :  { %165 = vmatprep.mubr.bf16.mxu0 %v1671_v0  ;;  %v1383_v2 = vld [vmem:[#allocation5] ss:$8 sps:$4 sm:$0xff]   ;;  %v103_v4 = vld [vmem:[#allocation2 + $0x8] sm:$0xff]  ;;  %133 = vmatprep.subr.bf16.mxu0 %v1381_v1  ;;  %v1384_v6 = vld [vmem:[#allocation7 + $0x4] ss:$16 sps:$4 sm:$0xff]   ;;  %vm129_vm0 = vcmask 130048  }
  0x5d   :  { %v104_v5 = vpack.c.bf16 %v103_v4, %v102_v3  ;;  %134 = vmatpush1.bf16.msra.mxu0 %v1383_v2  ;;  %v1386_v7 = vld [vmem:[#allocation7 + $0x8] ss:$16 sps:$4 sm:$0xff]   ;;  %588 = vmatprep.subr.bf16.mxu1 %v1384_v6  ;;  %v1388_v8 = vld [vmem:[#allocation7 + $0xc] ss:$16 sps:$4 sm:$0xff]   ;;  %v1389_v9 = vld [vmem:[#allocation7] ss:$16 sps:$4 sm:$0xff]  }
  0x5e   :  { %v1390_v10 = vld [vmem:[#allocation7 + $0x24] ss:$16 sps:$4 sm:$0xff]   ;;  %631 = vmatprep.subr.bf16.mxu0 %v1388_v8  ;;  %v1392_v11 = vld [vmem:[#allocation7 + $0x28] ss:$16 sps:$4 sm:$0xff]   ;;  %v1394_v12 = vld [vmem:[#allocation7 + $0x2c] ss:$16 sps:$4 sm:$0xff]   ;;  %589 = vmatpush1.bf16.msra.mxu1 %v1389_v9  ;;  %v109_v8 = vlaneseq }
  0x5f   :  { %v1395_v13 = vld [vmem:[#allocation7 + $0x20] ss:$16 sps:$4 sm:$0xff]   ;;  %590 = vmatprep.subr.bf16.mxu1 %v1390_v10  ;;  %v1396_v14 = vld [vmem:[#allocation7 + $0x44] ss:$16 sps:$4 sm:$0xff]   ;;  %v1400_v15 = vld [vmem:[#allocation7 + $0x4c] ss:$16 sps:$4 sm:$0xff]  }
  0x60   :  { %1177 = vmatmul.mubr.msk.bf16.vlgmr.msra.gmra.mrb[0].mxu0 %vm129_vm0, %v104_v5  ;;  %v1398_v16 = vld [vmem:[#allocation7 + $0x48] ss:$16 sps:$4 sm:$0xff]   ;;  %v1401_v17 = vld [vmem:[#allocation7 + $0x40] ss:$16 sps:$4 sm:$0xff]   ;;  %v1402_v18 = vld [vmem:[#allocation7 + $0x64] ss:$16 sps:$4 sm:$0xff]  }
  0x61   :  { %632 = vmatpush1.bf16.msra.mxu0 %v1386_v7  ;;  %v1406_v19 = vld [vmem:[#allocation7 + $0x6c] ss:$16 sps:$4 sm:$0xff]   ;;  %v1404_v20 = vld [vmem:[#allocation7 + $0x68] ss:$16 sps:$4 sm:$0xff]   ;;  %v1407_v21 = vld [vmem:[#allocation7 + $0x60] ss:$16 sps:$4 sm:$0xff]  }
  0x62   :  { %633 = vmatprep.subr.bf16.mxu0 %v1394_v12  ;;  %591 = vmatpush1.bf16.msra.mxu1 %v1395_v13  ;;  %v1408_v22 = vld [vmem:[#allocation7 + $0x84] ss:$16 sps:$4 sm:$0xff]   ;;  %v1412_v23 = vld [vmem:[#allocation7 + $0x8c] ss:$16 sps:$4 sm:$0xff]   ;;  %v1410_v24 = vld [vmem:[#allocation7 + $0x88] ss:$16 sps:$4 sm:$0xff]  }
  0x63   :  { %592 = vmatprep.subr.bf16.mxu1 %v1396_v14  ;;  %v1413_v25 = vld [vmem:[#allocation7 + $0x80] ss:$16 sps:$4 sm:$0xff]   ;;  %v1414_v26 = vld [vmem:[#allocation7 + $0xa4] ss:$16 sps:$4 sm:$0xff]   ;;  %v1418_v27 = vld [vmem:[#allocation7 + $0xac] ss:$16 sps:$4 sm:$0xff]  }
  0x64   :  { %v1416_v28 = vld [vmem:[#allocation7 + $0xa8] ss:$16 sps:$4 sm:$0xff]   ;;  %v1419_v29 = vld [vmem:[#allocation7 + $0xa0] ss:$16 sps:$4 sm:$0xff]   ;;  %v1420_v30 = vld [vmem:[#allocation7 + $0xc4] ss:$16 sps:$4 sm:$0xff]  }
  0x65   :  { %634 = vmatpush1.bf16.msra.mxu0 %v1392_v11  ;;  %v1424_v31 = vld [vmem:[#allocation7 + $0xcc] ss:$16 sps:$4 sm:$0xff]   ;;  %v1422_v32 = vld [vmem:[#allocation7 + $0xc8] ss:$16 sps:$4 sm:$0xff]   ;;  %v1425_v33 = vld [vmem:[#allocation7 + $0xc0] ss:$16 sps:$4 sm:$0xff]  }
  0x66   :  { %635 = vmatprep.subr.bf16.mxu0 %v1400_v15  ;;  %593 = vmatpush1.bf16.msra.mxu1 %v1401_v17  ;;  %v1426_v34 = vld [vmem:[#allocation7 + $0xe4] ss:$16 sps:$4 sm:$0xff]   ;;  %v1430_v35 = vld [vmem:[#allocation7 + $0xec] ss:$16 sps:$4 sm:$0xff]   ;;  %v1428_v36 = vld [vmem:[#allocation7 + $0xe8] ss:$16 sps:$4 sm:$0xff]  }
  0x67   :  { %594 = vmatprep.subr.bf16.mxu1 %v1402_v18  ;;  %v1431_v37 = vld [vmem:[#allocation7 + $0xe0] ss:$16 sps:$4 sm:$0xff]   ;;  %v1432_v38 = vld [vmem:[#allocation7 + $0x104] ss:$16 sps:$4 sm:$0xff]   ;;  %v1436_v39 = vld [vmem:[#allocation7 + $0x10c] ss:$16 sps:$4 sm:$0xff]  }
  0x68   :  { %v1434_v40 = vld [vmem:[#allocation7 + $0x108] ss:$16 sps:$4 sm:$0xff]   ;;  %v1437_v41 = vld [vmem:[#allocation7 + $0x100] ss:$16 sps:$4 sm:$0xff]   ;;  %v1438_v42 = vld [vmem:[#allocation7 + $0x124] ss:$16 sps:$4 sm:$0xff]  }
  0x69   :  { %636 = vmatpush1.bf16.msra.mxu0 %v1398_v16  ;;  %v1442_v43 = vld [vmem:[#allocation7 + $0x12c] ss:$16 sps:$4 sm:$0xff]   ;;  %v1440_v44 = vld [vmem:[#allocation7 + $0x128] ss:$16 sps:$4 sm:$0xff]   ;;  %v1443_v45 = vld [vmem:[#allocation7 + $0x120] ss:$16 sps:$4 sm:$0xff]  }
  0x6a   :  { %637 = vmatprep.subr.bf16.mxu0 %v1406_v19  ;;  %595 = vmatpush1.bf16.msra.mxu1 %v1407_v21  ;;  %v1444_v46 = vld [vmem:[#allocation7 + $0x144] ss:$16 sps:$4 sm:$0xff]   ;;  %v1448_v47 = vld [vmem:[#allocation7 + $0x14c] ss:$16 sps:$4 sm:$0xff]   ;;  %v1446_v48 = vld [vmem:[#allocation7 + $0x148] ss:$16 sps:$4 sm:$0xff]  }
  0x6b   :  { %596 = vmatprep.subr.bf16.mxu1 %v1408_v22  ;;  %v1449_v49 = vld [vmem:[#allocation7 + $0x140] ss:$16 sps:$4 sm:$0xff]   ;;  %v1450_v50 = vld [vmem:[#allocation7 + $0x164] ss:$16 sps:$4 sm:$0xff]   ;;  %v1454_v51 = vld [vmem:[#allocation7 + $0x16c] ss:$16 sps:$4 sm:$0xff]  }
  0x6c   :  { %v1452_v52 = vld [vmem:[#allocation7 + $0x168] ss:$16 sps:$4 sm:$0xff]   ;;  %v1455_v53 = vld [vmem:[#allocation7 + $0x160] ss:$16 sps:$4 sm:$0xff]   ;;  %v1456_v54 = vld [vmem:[#allocation7 + $0x184] ss:$16 sps:$4 sm:$0xff]  }
  0x6d   :  { %638 = vmatpush1.bf16.msra.mxu0 %v1404_v20  ;;  %v1460_v55 = vld [vmem:[#allocation7 + $0x18c] ss:$16 sps:$4 sm:$0xff]   ;;  %v1458_v56 = vld [vmem:[#allocation7 + $0x188] ss:$16 sps:$4 sm:$0xff]   ;;  %v1461_v57 = vld [vmem:[#allocation7 + $0x180] ss:$16 sps:$4 sm:$0xff]  }
  0x6e   :  { %639 = vmatprep.subr.bf16.mxu0 %v1412_v23  ;;  %597 = vmatpush1.bf16.msra.mxu1 %v1413_v25  ;;  %v1462_v58 = vld [vmem:[#allocation7 + $0x1a4] ss:$16 sps:$4 sm:$0xff]   ;;  %v1466_v59 = vld [vmem:[#allocation7 + $0x1ac] ss:$16 sps:$4 sm:$0xff]   ;;  %v1464_v60 = vld [vmem:[#allocation7 + $0x1a8] ss:$16 sps:$4 sm:$0xff]  }
  0x6f   :  { %598 = vmatprep.subr.bf16.mxu1 %v1414_v26  ;;  %v1467_v61 = vld [vmem:[#allocation7 + $0x1a0] ss:$16 sps:$4 sm:$0xff]   ;;  %v1468_v62 = vld [vmem:[#allocation7 + $0x1c4] ss:$16 sps:$4 sm:$0xff]   ;;  %v1472_v63 = vld [vmem:[#allocation7 + $0x1cc] ss:$16 sps:$4 sm:$0xff]  }
  0x70   :  { %v1470_v0 = vld [vmem:[#allocation7 + $0x1c8] ss:$16 sps:$4 sm:$0xff]   ;;  %v1473_v1 = vld [vmem:[#allocation7 + $0x1c0] ss:$16 sps:$4 sm:$0xff]   ;;  %v1474_v2 = vld [vmem:[#allocation7 + $0x1e4] ss:$16 sps:$4 sm:$0xff]  }
  0x71   :  { %640 = vmatpush1.bf16.msra.mxu0 %v1410_v24  ;;  %v1478_v3 = vld [vmem:[#allocation7 + $0x1ec] ss:$16 sps:$4 sm:$0xff]   ;;  %v1476_v4 = vld [vmem:[#allocation7 + $0x1e8] ss:$16 sps:$4 sm:$0xff]   ;;  %v1479_v5 = vld [vmem:[#allocation7 + $0x1e0] ss:$16 sps:$4 sm:$0xff]  }
  0x72   :  { %641 = vmatprep.subr.bf16.mxu0 %v1418_v27  ;;  %599 = vmatpush1.bf16.msra.mxu1 %v1419_v29  ;;  %v1480_v6 = vld [vmem:[#allocation8 + $0x40] sm:$0xff]   ;;  %v1811_v9 = vshrl.u32 %v109_v8, 7  ;;  %vm1673_vm1 = vmmov 0   ;;  %s1674_s16 = smov [#allocation11]  }
  0x73   :  { %600 = vmatprep.subr.bf16.mxu1 %v1420_v30  ;;  %v1481_v7 = vld [vmem:[#allocation8 + $0xc0] sm:$0xff]   ;;  %s1161_s18 = sshll.u32 %s1674_s16, 4  ;;  %s1162_s18 = int_to_ptr.vmem [resolvable:$true] %s1161_s18 }
  0x74   :  { %v111_v10 = vsub.s32 0, %v1811_v9  ;;  %v107_v11 = vld [vmem:[%s1863_s2] sm:$0x3]  ;;  %v115_v12 = vsub.s32 1, %v1811_v9  ;;  %s1630_s20 = scalar_lea.vmem %s1162_s18, 128  ;;  %p1635_p13 = scmp.lt.s32.totalorder %s1162_s18, %s1162_s18 }
  0x75   :  { %642 = vmatpush1.bf16.msra.mxu0 %v1416_v28  ;;  %v1482_v29 = vld [vmem:[#allocation8] sm:$0xff]   ;;  %p1631_p12 = scmp.ne.s32.totalorder %s1162_s18, %s1630_s20  ;;  %p1636_p0 = scmp.lt.s32.totalorder %s1630_s20, %s1630_s20 }
  0x76   :  { %643 = vmatprep.subr.bf16.mxu0 %v1424_v31  ;;  %601 = vmatpush1.bf16.msra.mxu1 %v1425_v33  ;;  %v112_v13 = vrot.slane %v107_v11, %v111_v10  ;;  %v116_v14 = vrot.slane %v107_v11, %v115_v12  ;;  %v1483_v30 = vld [vmem:[#allocation8 + $0x80] sm:$0xff]   ;;  %v1484_v31 = vld [vmem:[#allocation8 + $0x48] sm:$0xff]  }
  0x77   :  { %602 = vmatprep.subr.bf16.mxu1 %v1426_v34  ;;  %v1486_v33 = vld [vmem:[#allocation8 + $0x8] sm:$0xff]   ;;  %p1637_p1 = por %p1636_p0, %p1635_p13 }
  0x78   :  { %v1487_v34 = vld [vmem:[#allocation8 + $0x88] sm:$0xff]  }
  0x79   :  { %644 = vmatpush1.bf16.msra.mxu0 %v1422_v32  ;;  %v1485_v32 = vld [vmem:[#allocation8 + $0xc8] sm:$0xff]   ;;  %p1638_p2 = pnand %p1637_p1, %p1631_p12 }
  0x7a   :  { %645 = vmatprep.subr.bf16.mxu0 %v1430_v35  ;;  %603 = vmatpush1.bf16.msra.mxu1 %v1431_v37  ;;  %v1488_v35 = vld [vmem:[#allocation8 + $0x50] sm:$0xff]  }
  0x7b   :  { %604 = vmatprep.subr.bf16.mxu1 %v1432_v38  ;;  %v1490_v37 = vld [vmem:[#allocation8 + $0x10] sm:$0xff]  }
  0x7c   :  { %v1491_v38 = vld [vmem:[#allocation8 + $0x90] sm:$0xff]  }
  0x7d   :  { %646 = vmatpush1.bf16.msra.mxu0 %v1428_v36  ;;  %v1489_v36 = vld [vmem:[#allocation8 + $0xd0] sm:$0xff]  }
  0x7e   :  { %647 = vmatprep.subr.bf16.mxu0 %v1436_v39  ;;  %605 = vmatpush1.bf16.msra.mxu1 %v1437_v41  ;;  %v1492_v39 = vld [vmem:[#allocation8 + $0x58] sm:$0xff]  }
  0x7f   :  { %606 = vmatprep.subr.bf16.mxu1 %v1438_v42  ;;  %v1494_v41 = vld [vmem:[#allocation8 + $0x18] sm:$0xff]  }
  0x80   :  { %v1495_v42 = vld [vmem:[#allocation8 + $0x98] sm:$0xff]  }
  0x81   :  { %648 = vmatpush1.bf16.msra.mxu0 %v1434_v40  ;;  %v1493_v40 = vld [vmem:[#allocation8 + $0xd8] sm:$0xff]  }
  0x82   :  { %649 = vmatprep.subr.bf16.mxu0 %v1442_v43  ;;  %607 = vmatpush1.bf16.msra.mxu1 %v1443_v45  ;;  %v1496_v43 = vld [vmem:[#allocation8 + $0x60] sm:$0xff]  }
  0x83   :  { %608 = vmatprep.subr.bf16.mxu1 %v1444_v46  ;;  %v1498_v45 = vld [vmem:[#allocation8 + $0x20] sm:$0xff]  }
  0x84   :  { %v1499_v46 = vld [vmem:[#allocation8 + $0xa0] sm:$0xff]  }
  0x85   :  { %650 = vmatpush1.bf16.msra.mxu0 %v1440_v44  ;;  %v1497_v44 = vld [vmem:[#allocation8 + $0xe0] sm:$0xff]  }
  0x86   :  { %651 = vmatprep.subr.bf16.mxu0 %v1448_v47  ;;  %609 = vmatpush1.bf16.msra.mxu1 %v1449_v49  ;;  %v1500_v47 = vld [vmem:[#allocation8 + $0x68] sm:$0xff]  }
  0x87   :  { %610 = vmatprep.subr.bf16.mxu1 %v1450_v50  ;;  %v1502_v49 = vld [vmem:[#allocation8 + $0x28] sm:$0xff]  }
  0x88   :  { %v1503_v50 = vld [vmem:[#allocation8 + $0xa8] sm:$0xff]  }
  0x89   :  { %652 = vmatpush1.bf16.msra.mxu0 %v1446_v48  ;;  %v1501_v48 = vld [vmem:[#allocation8 + $0xe8] sm:$0xff]  }
  0x8a   :  { %653 = vmatprep.subr.bf16.mxu0 %v1454_v51  ;;  %611 = vmatpush1.bf16.msra.mxu1 %v1455_v53  ;;  %v1504_v51 = vld [vmem:[#allocation8 + $0x70] sm:$0xff]  }
  0x8b   :  { %612 = vmatprep.subr.bf16.mxu1 %v1456_v54  ;;  %v1506_v53 = vld [vmem:[#allocation8 + $0x30] sm:$0xff]  }
  0x8c   :  { %v1507_v54 = vld [vmem:[#allocation8 + $0xb0] sm:$0xff]  }
  0x8d   :  { %654 = vmatpush1.bf16.msra.mxu0 %v1452_v52  ;;  %v1505_v52 = vld [vmem:[#allocation8 + $0xf0] sm:$0xff]  }
  0x8e   :  { %655 = vmatprep.subr.bf16.mxu0 %v1460_v55  ;;  %613 = vmatpush1.bf16.msra.mxu1 %v1461_v57  ;;  %v1508_v55 = vld [vmem:[#allocation8 + $0x78] sm:$0xff]  }
  0x8f   :  { %614 = vmatprep.subr.bf16.mxu1 %v1462_v58  ;;  %v1510_v57 = vld [vmem:[#allocation8 + $0x38] sm:$0xff]  }
  0x90   :  { %v1511_v58 = vld [vmem:[#allocation8 + $0xb8] sm:$0xff]  }
  0x91   :  { %656 = vmatpush1.bf16.msra.mxu0 %v1458_v56  ;;  %v1509_v56 = vld [vmem:[#allocation8 + $0xf8] sm:$0xff]  }
  0x92   :  { %657 = vmatprep.subr.bf16.mxu0 %v1466_v59  ;;  %615 = vmatpush1.bf16.msra.mxu1 %v1467_v61  ;;  %v1672_v59 = vmov 0.0   ;;  %v246_v61 = vld [vmem:[%s1865_s4] sm:$0xf] }
  0x93   :  { %616 = vmatprep.subr.bf16.mxu1 %v1468_v62  ;;  %v262_v62 = vsub.s32 3, %v1811_v9 }
  0x95   :  { %658 = vmatpush1.bf16.msra.mxu0 %v1464_v60  ;;  %v258_v60 = vsub.s32 2, %v1811_v9 }
  0x96   :  { %659 = vmatprep.subr.bf16.mxu0 %v1472_v63  ;;  %617 = vmatpush1.bf16.msra.mxu1 %v1473_v1  ;;  %v251_v63 = vrot.slane %v246_v61, %v111_v10  ;;  %v255_v1 = vrot.slane %v246_v61, %v115_v12 }
  0x97   :  { %618 = vmatprep.subr.bf16.mxu1 %v1474_v2  ;;  %v263_v2 = vrot.slane %v246_v61, %v262_v62 }
  0x99   :  { %660 = vmatpush1.bf16.msra.mxu0 %v1470_v0  ;;  %v259_v0 = vrot.slane %v246_v61, %v258_v60 }
  0x9a   :  { %661 = vmatprep.subr.bf16.mxu0 %v1478_v3  ;;  %619 = vmatpush1.bf16.msra.mxu1 %v1479_v5 }
  0x9b   :  { %1293 = vmatprep.subr.bf16.mxu1 %v1480_v6 }
  0x9d   :  { %662 = vmatpush1.bf16.msra.mxu0 %v1476_v4 }
  0x9e   :  { %1315 = vmatprep.subr.bf16.mxu0 %v1481_v7 }
 0x133   :  { %v167_v15 = vpop.f32.mrb[0].mxu0 }
 0x134   :  { %v168_v16 = vadd.f32 %v167_v15, %v112_v13  ;;  %v169_v17 = vpop.f32.mrb[1].mxu0 }
 0x135   :  { %v170_v18 = vadd.f32 %v169_v17, %v116_v14  ;;  %v171_v19 = vpop.f32.mrb[2].mxu0 }
 0x136   :  { %v172_v20 = vadd.f32 %v171_v19, %v112_v13  ;;  %v173_v21 = vpop.f32.mrb[3].mxu0  ;;  %v176_v23 = vmax.f32 %v168_v16, 0.0 }
 0x137   :  { %v174_v22 = vadd.f32 %v173_v21, %v116_v14  ;;  %v177_v25 = vmax.f32 %v170_v18, 0.0 }
 0x138   :  { %v178_v24 = vmax.f32 %v172_v20, 0.0 }
 0x139   :  { %v179_v26 = vmax.f32 %v174_v22, 0.0 }
 0x13a   :  { %v180_v27 = vpack.c.bf16 %v178_v24, %v176_v23 }
 0x13b   :  { %v181_v28 = vpack.c.bf16 %v179_v26, %v177_v25 }
 0x13d   :  { %620 = vmatprep.mubr.bf16.mxu1 %v181_v28  ;;  %663 = vmatprep.mubr.bf16.mxu0 %v181_v28 }
 0x13e   :  { %621 = vmatmul.mubr.bf16.vlgmr.msra.gmra.mrb[0].mxu1 %v180_v27  ;;  %664 = vmatmul.mubr.bf16.vlgmr.msra.gmra.mrb[4].mxu0 %v180_v27 }
 0x13f   :  { %1294 = vmatpush3.bf16.msra.mxu1 %v1482_v29  ;;  %1316 = vmatpush3.bf16.msra.mxu0 %v1483_v30 }
 0x140   :  { %1295 = vmatprep.subr.bf16.mxu1 %v1484_v31  ;;  %1317 = vmatprep.subr.bf16.mxu0 %v1485_v32  ;;  %v1512_v31 = vld [vmem:[#allocation10] sm:$0xff]   ;;  %v1513_v32 = vld [vmem:[#allocation10 + $0x8] sm:$0xff]  }
 0x143   :  { %1296 = vmatpush3.bf16.msra.mxu1 %v1486_v33  ;;  %1318 = vmatpush3.bf16.msra.mxu0 %v1487_v34  ;;  %v1514_v33 = vld [vmem:[#allocation10 + $0x10] sm:$0xff]   ;;  %v1515_v34 = vld [vmem:[#allocation10 + $0x18] sm:$0xff]  }
 0x144   :  { %1297 = vmatprep.subr.bf16.mxu1 %v1488_v35  ;;  %1319 = vmatprep.subr.bf16.mxu0 %v1489_v36  ;;  %v1516_v35 = vld [vmem:[#allocation10 + $0x20] sm:$0xff]   ;;  %v1517_v36 = vld [vmem:[#allocation10 + $0x28] sm:$0xff]  }
 0x147   :  { %1298 = vmatpush3.bf16.msra.mxu1 %v1490_v37  ;;  %1320 = vmatpush3.bf16.msra.mxu0 %v1491_v38  ;;  %v1518_v37 = vld [vmem:[#allocation10 + $0x30] sm:$0xff]   ;;  %v1519_v38 = vld [vmem:[#allocation10 + $0x38] sm:$0xff]  }
 0x148   :  { %1299 = vmatprep.subr.bf16.mxu1 %v1492_v39  ;;  %1321 = vmatprep.subr.bf16.mxu0 %v1493_v40 }
 0x14b   :  { %1300 = vmatpush3.bf16.msra.mxu1 %v1494_v41  ;;  %1322 = vmatpush3.bf16.msra.mxu0 %v1495_v42  ;;  %v1242_v41 = vld [vmem:[%s1867_s6] ss:$0 sm:$0xff] }
 0x14c   :  { %1301 = vmatprep.subr.bf16.mxu1 %v1496_v43  ;;  %1323 = vmatprep.subr.bf16.mxu0 %v1497_v44 }
 0x14f   :  { %1302 = vmatpush3.bf16.msra.mxu1 %v1498_v45  ;;  %1324 = vmatpush3.bf16.msra.mxu0 %v1499_v46 }
 0x150   :  { %1303 = vmatprep.subr.bf16.mxu1 %v1500_v47  ;;  %1325 = vmatprep.subr.bf16.mxu0 %v1501_v48 }
 0x153   :  { %1304 = vmatpush3.bf16.msra.mxu1 %v1502_v49  ;;  %1326 = vmatpush3.bf16.msra.mxu0 %v1503_v50 }
 0x154   :  { %1305 = vmatprep.subr.bf16.mxu1 %v1504_v51  ;;  %1327 = vmatprep.subr.bf16.mxu0 %v1505_v52 }
 0x157   :  { %1306 = vmatpush3.bf16.msra.mxu1 %v1506_v53  ;;  %1328 = vmatpush3.bf16.msra.mxu0 %v1507_v54 }
 0x158   :  { %1307 = vmatprep.subr.bf16.mxu1 %v1508_v55  ;;  %1329 = vmatprep.subr.bf16.mxu0 %v1509_v56 }
 0x15b   :  { %1308 = vmatpush3.bf16.msra.mxu1 %v1510_v57  ;;  %1330 = vmatpush3.bf16.msra.mxu0 %v1511_v58 }
 0x15c   :  { %1346 = vmatprep.subr.bf16.mxu1 %v1672_v59 }
 0x211   :  { %v622_v3 = vpop.f32.mrb[0].mxu1  ;;  %v665_v4 = vpop.f32.mrb[4].mxu0 }
 0x212   :  { %v623_v5 = vadd.f32 %v622_v3, %v251_v63  ;;  %v666_v6 = vadd.f32 %v665_v4, %v259_v0  ;;  %v624_v7 = vpop.f32.mrb[1].mxu1  ;;  %v667_v8 = vpop.f32.mrb[5].mxu0 }
 0x213   :  { %v625_v11 = vadd.f32 %v624_v7, %v255_v1  ;;  %v668_v13 = vadd.f32 %v667_v8, %v263_v2  ;;  %v626_v14 = vpop.f32.mrb[2].mxu1  ;;  %v669_v15 = vpop.f32.mrb[6].mxu0 }
 0x214   :  { %v627_v16 = vadd.f32 %v626_v14, %v251_v63  ;;  %v670_v17 = vadd.f32 %v669_v15, %v259_v0  ;;  %v628_v18 = vpop.f32.mrb[3].mxu1  ;;  %v671_v19 = vpop.f32.mrb[7].mxu0  ;;  %v674_v21 = vmax.f32 %v623_v5, 0.0  ;;  %v676_v9 = vmax.f32 %v666_v6, 0.0 }
 0x215   :  { %v629_v10 = vadd.f32 %v628_v18, %v255_v1  ;;  %v672_v20 = vadd.f32 %v671_v19, %v263_v2  ;;  %v675_v23 = vmax.f32 %v625_v11, 0.0  ;;  %v677_v24 = vmax.f32 %v668_v13, 0.0 }
 0x216   :  { %v678_v12 = vmax.f32 %v627_v16, 0.0  ;;  %v680_v22 = vmax.f32 %v670_v17, 0.0 }
 0x217   :  { %v679_v25 = vmax.f32 %v629_v10, 0.0  ;;  %v681_v26 = vmax.f32 %v672_v20, 0.0 }
 0x218   :  { %v682_v27 = vpack.c.bf16 %v678_v12, %v674_v21  ;;  %v684_v28 = vpack.c.bf16 %v680_v22, %v676_v9 }
 0x219   :  { %v683_v29 = vpack.c.bf16 %v679_v25, %v675_v23  ;;  %v685_v30 = vpack.c.bf16 %v681_v26, %v677_v24 }
 0x21b   :  { %981 = vmatprep.mubr.bf16.mxu1 %v683_v29  ;;  %1022 = vmatprep.mubr.bf16.mxu0 %v685_v30 }
 0x21c   :  { %982 = vmatmul.mubr.bf16.vlgmr.msra.gmra.mrb[4].mxu1 %v682_v27  ;;  %1023 = vmatmul.mubr.bf16.vlgmr.msra.gmra.mrb[8].mxu0 %v684_v28 }
 0x21d   :  { %1347 = vmatpush3.bf16.msra.mxu1 %v1512_v31  ;;  %1362 = vmatprep.mubr.msk.bf16.mxu1 %vm1673_vm1, %v1672_v59 }
 0x21e   :  { %1348 = vmatprep.subr.bf16.mxu1 %v1672_v59 }
 0x221   :  { %1349 = vmatpush3.bf16.msra.mxu1 %v1513_v32 }
 0x222   :  { %1350 = vmatprep.subr.bf16.mxu1 %v1672_v59 }
 0x225   :  { %1351 = vmatpush3.bf16.msra.mxu1 %v1514_v33 }
 0x226   :  { %1352 = vmatprep.subr.bf16.mxu1 %v1672_v59 }
 0x229   :  { %1353 = vmatpush3.bf16.msra.mxu1 %v1515_v34 }
 0x22a   :  { %1354 = vmatprep.subr.bf16.mxu1 %v1672_v59 }
 0x22d   :  { %1355 = vmatpush3.bf16.msra.mxu1 %v1516_v35 }
 0x22e   :  { %1356 = vmatprep.subr.bf16.mxu1 %v1672_v59 }
 0x231   :  { %1357 = vmatpush3.bf16.msra.mxu1 %v1517_v36 }
 0x232   :  { %1358 = vmatprep.subr.bf16.mxu1 %v1672_v59 }
 0x235   :  { %1359 = vmatpush3.bf16.msra.mxu1 %v1518_v37 }
 0x236   :  { %1360 = vmatprep.subr.bf16.mxu1 %v1672_v59  ;;  %v1275_v59 = vld [vmem:[%s1869_s8] ss:$0 sm:$0xff] }
 0x239   :  { %1361 = vmatpush3.bf16.msra.mxu1 %v1519_v38 }
 0x2ef   :  { %v1309_v39 = vpop.f32.mrb[4].mxu1  ;;  %v1331_v40 = vpop.f32.mrb[8].mxu0 }
 0x2f0   :  { %v1310_v42 = vpop.f32.mrb[5].mxu1  ;;  %v1332_v43 = vpop.f32.mrb[9].mxu0 }
 0x2f1   :  { %v1311_v44 = vadd.f32 %v1310_v42, %v1309_v39  ;;  %v1333_v45 = vadd.f32 %v1332_v43, %v1331_v40  ;;  %v1312_v46 = vpop.f32.mrb[6].mxu1  ;;  %v1334_v47 = vpop.f32.mrb[10].mxu0 }
 0x2f2   :  { %v1313_v48 = vpop.f32.mrb[7].mxu1  ;;  %v1335_v49 = vpop.f32.mrb[11].mxu0 }
 0x2f3   :  { %v984_v50 = vadd.f32 %v1311_v44, %v1242_v41  ;;  %v1314_v51 = vadd.f32 %v1313_v48, %v1312_v46  ;;  %v1336_v52 = vadd.f32 %v1335_v49, %v1334_v47 }
 0x2f5   :  { %v1025_v53 = vadd.f32 %v1333_v45, %v984_v50  ;;  %v987_v54 = vadd.f32 %v1314_v51, %v1242_v41 }
 0x2f7   :  { %v1028_v55 = vadd.f32 %v1336_v52, %v987_v54  ;;  %v1031_v56 = vmax.f32 %v1025_v53, 0.0 }
 0x2f9   :  { %v1032_v57 = vmax.f32 %v1028_v55, 0.0 }
 0x2fb   :  { %v1033_v58 = vpack.c.bf16 %v1032_v57, %v1031_v56 }
 0x2fd   :  { %1363 = vmatmul.mubr.bf16.vlgmr.msra.gmra.mrb[8].mxu1 %v1033_v58 }
 0x3d0   :  { %v1139_v60 = vpop.f32.mrb[8].mxu1 }
 0x3d1   :  { %v1364_v61 = vpop.f32.mrb[9].mxu1  ;;  %v1140_v63 = vadd.f32 %v1275_v59, %v1139_v60 }
 0x3d2   :  { %v1142_v62 = vpop.f32.mrb[10].mxu1 }
 0x3d3   :  { %v1143_v0 = vadd.f32 %v1275_v59, %v1142_v62  ;;  %v1365_v1 = vpop.f32.mrb[11].mxu1 }
 0x3d5   :  { %v1291_v2 = vpack.c.bf16 %v1143_v0, %v1140_v63 }
 0x3d7   :  { %1292 = vst [vmem:[#allocation11] sm:$0xff] %v1291_v2  }
 0x3d8   :  { %1641 = shalt.err (!%p1638_p2)
}
 0x3d9   :  { %s1642_s21 = scalar_lea.hbm %s1870_s9, 128 }
 0x3da   :  { %p1643_p3 = scmp.ne.s32.totalorder %s1870_s9, %s1642_s21  ;;  %p1646_p4 = scmp.lt.u32.totalorder %s1642_s21, %s1870_s9 }
 0x3dc   :  { %p1648_p5 = pnand %p1646_p4, %p1643_p3 }
 0x3de   :  { %1651 = shalt.err (!%p1648_p5)
}
 0x3df   :  { %1167 = dma.vmem_to_hbm [thread:$0]  %s1162_s18, 128, %s1870_s9, [#allocation4], %s1664_s1, %s1664_s1, %s1665_s10  }
 0x3e0   :  { %1658 = dma.done.wait [#allocation4], 128  }
 0x3e1   :  { %1659 = vsyncadd [#allocation4], 4294967168 }
 0x3e2   :  { %1171 = vsyncpa [#allocation3], 1 }
 0x3e3   :  { %1172 = vsyncpa [#allocation6], 1 }
 0x3e4   :  { %1173 = vsyncpa [#allocation9], 1 }
 0x3e5   :  { %1174 = vsyncpa [#allocation4], 1 }

</bundles_post_ra>
